<compile_context>
chip_gen: v6e
topology: v6e:2x2x1
jax: 0.10.0
libtpu: 0.0.40
codegen_flags: <defaults>
</compile_context>

<pallas_src>
import jax
import jax.numpy as jnp
from jax.experimental import pallas as pl
from jax.experimental.pallas import tpu as pltpu


def _round_up(n, m):
    return ((n + m - 1) // m) * m


# ----------------------------------------------------------------------------
# Kernel 1: fused (top+bottom) per-mode complex channel contraction
#   out[b, o, k] = sum_i x[b, i, k] * w[o, i, k]      (complex MAC)
# x as (real, imag) of shape (B, Cin, Kp); w as (Cin, Cout, Kp) real/imag/(r+i).
# Kp = 2*hm0*hm1 padded up to a multiple of 128 (lane-dense).
# ----------------------------------------------------------------------------
def _spectral_kernel(xr_ref, xi_ref, wr_ref, wi_ref, ws_ref, or_ref, oi_ref):
    xr = xr_ref[0]                         # (Cin, Kp)
    xi = xi_ref[0]                         # (Cin, Kp)
    xs = xr + xi                           # Gauss-trick operand, once per tile

    cin = xr.shape[0]

    acc_r = None
    acc_i = None
    # Static unroll over Cin (small): only two (Cout, Kp) accumulators stay
    # live (no (Cout, Cin, Kp) intermediate, no cross-sublane XLU reduce).
    for i in range(cin):
        wr_i = wr_ref[i]                   # (Cout, Kp) contiguous tile
        wi_i = wi_ref[i]
        ws_i = ws_ref[i]
        xr_i = xr[i:i + 1, :]              # (1, Kp) -> sublane broadcast
        xi_i = xi[i:i + 1, :]
        xs_i = xs[i:i + 1, :]
        # Gauss 3-multiply complex product: real = t - u, imag = ws*xs - t - u
        t = wr_i * xr_i
        u = wi_i * xi_i
        r = t - u
        im = ws_i * xs_i - t - u
        if acc_r is None:
            acc_r, acc_i = r, im
        else:
            acc_r = acc_r + r
            acc_i = acc_i + im

    or_ref[0] = acc_r
    oi_ref[0] = acc_i


def spectral_contract(xr, xi, wr, wi, ws):
    # xr/xi: (B, Cin, Kp); wr/wi/ws: (Cin, Cout, Kp)
    B, Cin, Kp = xr.shape
    Cout = wr.shape[1]

    x_spec = pl.BlockSpec((1, Cin, Kp), lambda b: (b, 0, 0))
    # Weight index_map is constant over the grid so Pallas only DMAs the
    # weights once (re-fetch is skipped when the block index does not change).
    w_spec = pl.BlockSpec((Cin, Cout, Kp), lambda b: (0, 0, 0))
    o_spec = pl.BlockSpec((1, Cout, Kp), lambda b: (b, 0, 0))

    flops = 8 * B * Cout * Cin * Kp
    bytes_accessed = 4 * (2 * B * Cin * Kp + 3 * Cin * Cout * Kp
                          + 2 * B * Cout * Kp)

    return pl.pallas_call(
        _spectral_kernel,
        out_shape=(jax.ShapeDtypeStruct((B, Cout, Kp), jnp.float32),
                   jax.ShapeDtypeStruct((B, Cout, Kp), jnp.float32)),
        grid_spec=pltpu.PrefetchScalarGridSpec(
            num_scalar_prefetch=0,
            grid=(B,),
            in_specs=[x_spec, x_spec, w_spec, w_spec, w_spec],
            out_specs=[o_spec, o_spec],
        ),
        compiler_params=pltpu.CompilerParams(
            dimension_semantics=("parallel",),
            vmem_limit_bytes=32 * 1024 * 1024,
        ),
        cost_estimate=pl.CostEstimate(
            flops=flops, transcendentals=0, bytes_accessed=bytes_accessed),
    )(xr, xi, wr, wi, ws)


# ----------------------------------------------------------------------------
# Kernel 2: linear (1x1 conv, bias=False) skip + residual add, spatially tiled
#   out[b, o, s] = x_fno[b, o, s] + sum_i w[o, i] * x[b, i, s]
# ----------------------------------------------------------------------------
def _skip_add_kernel(x_ref, w_ref, xfno_ref, o_ref):
    x = x_ref[0]                                                  # (Cin, TS)
    w = w_ref[...]                                                # (Cout, Cin)
    skip = jnp.dot(w, x, preferred_element_type=jnp.float32)      # MXU
    o_ref[0] = xfno_ref[0] + skip


def _pick_s_tile(s, max_tile=2048):
    """Largest multiple of 128 <= max_tile that divides s (else the full s)."""
    if s % 128 != 0:
        return s
    best = 128
    t = 128
    while t <= min(s, max_tile):
        if s % t == 0:
            best = t
        t += 128
    return best


def skip_add(x_flat, skip_w, xfno_flat):
    B, Cin, S = x_flat.shape
    Cout = skip_w.shape[0]
    ts = _pick_s_tile(S)
    ns = S // ts

    flops = 2 * B * Cout * Cin * S + B * Cout * S
    bytes_accessed = (x_flat.dtype.itemsize * B * Cin * S
                      + skip_w.dtype.itemsize * Cout * Cin
                      + 4 * 2 * B * Cout * S)

    return pl.pallas_call(
        _skip_add_kernel,
        out_shape=jax.ShapeDtypeStruct((B, Cout, S), jnp.float32),
        grid_spec=pltpu.PrefetchScalarGridSpec(
            num_scalar_prefetch=0,
            grid=(B, ns),
            in_specs=[
                pl.BlockSpec((1, Cin, ts), lambda b, s: (b, 0, s)),
                pl.BlockSpec((Cout, Cin), lambda b, s: (0, 0)),
                pl.BlockSpec((1, Cout, ts), lambda b, s: (b, 0, s)),
            ],
            out_specs=pl.BlockSpec((1, Cout, ts), lambda b, s: (b, 0, s)),
        ),
        # x_fno (input index 2) aliases output 0: reuses the irfft2 buffer.
        input_output_aliases={2: 0},
        compiler_params=pltpu.CompilerParams(
            dimension_semantics=("parallel", "parallel"),
            vmem_limit_bytes=32 * 1024 * 1024,
        ),
        cost_estimate=pl.CostEstimate(
            flops=flops, transcendentals=0, bytes_accessed=bytes_accessed),
    )(x_flat, skip_w, xfno_flat)


# ----------------------------------------------------------------------------
# Full FNOBlocks1 forward (default config, index=0)
# ----------------------------------------------------------------------------
def fno_block_forward(x, params, *, bf16_skip_matmul=False):
    B, Cin, H, W = x.shape
    Cout, _, hm0, hm1 = params["wr_top"].shape
    K = hm0 * hm1
    K2 = 2 * K
    Kp = _round_up(K2, 128)

    # rfft2 with fft_norm='forward' (forward transform scaled by 1/N)
    # TODO(synk): rfft2/irfft2 have no Pallas TPU primitive; they stay in jnp.fft.
    x_ft = jnp.fft.rfft2(x, norm="forward")             # (B, Cin, H, W//2+1) c64

    # Fuse top & bottom mode blocks: one slice, one real/imag split, one call.
    modes = jnp.concatenate(
        [x_ft[:, :, :hm0, :hm1], x_ft[:, :, H - hm0:, :hm1]], axis=2
    )                                                    # (B, Cin, 2*hm0, hm1)
    xr = jnp.real(modes).reshape(B, Cin, K2).astype(jnp.float32)
    xi = jnp.imag(modes).reshape(B, Cin, K2).astype(jnp.float32)
    if Kp != K2:
        pad = [(0, 0), (0, 0), (0, Kp - K2)]
        xr = jnp.pad(xr, pad)
        xi = jnp.pad(xi, pad)

    # Stack (top, bottom) weights along the flattened-mode axis, transpose to
    # (Cin, Cout, Kp) so each Cin slice is a contiguous (Cout, Kp) tile, pad lanes.
    def pack_w(w_top, w_bot):
        w = jnp.concatenate(
            [w_top.reshape(Cout, Cin, K), w_bot.reshape(Cout, Cin, K)], axis=-1)
        w = jnp.transpose(w, (1, 0, 2)).astype(jnp.float32)   # (Cin, Cout, K2)
        if Kp != K2:
            w = jnp.pad(w, [(0, 0), (0, 0), (0, Kp - K2)])
        return w

    wr = pack_w(params["wr_top"], params["wr_bot"])
    wi = pack_w(params["wi_top"], params["wi_bot"])
    ws = wr + wi                                          # Gauss-trick operand

    o_r, o_i = spectral_contract(xr, xi, wr, wi, ws)
    o_r = o_r[:, :, :K2].reshape(B, Cout, 2 * hm0, hm1)
    o_i = o_i[:, :, :K2].reshape(B, Cout, 2 * hm0, hm1)
    out_modes = jax.lax.complex(o_r, o_i)

    out_ft = jnp.zeros((B, Cout, H, W // 2 + 1), dtype=jnp.complex64)
    out_ft = out_ft.at[:, :, :hm0, :hm1].set(out_modes[:, :, :hm0])
    out_ft = out_ft.at[:, :, H - hm0:, :hm1].set(out_modes[:, :, hm0:])

    x_fno = jnp.fft.irfft2(out_ft, s=(H, W), norm="forward")    # (B, Cout, H, W)

    x_in = x.reshape(B, Cin, H * W).astype(jnp.float32)
    skip_w = params["skip_w"].astype(jnp.float32)
    if bf16_skip_matmul:
        # v6e/v7x option: bf16 MXU operands with f32 accumulation.
        x_in = x_in.astype(jnp.bfloat16)
        skip_w = skip_w.astype(jnp.bfloat16)

    out = skip_add(x_in, skip_w,
                   x_fno.astype(jnp.float32).reshape(B, Cout, H * W))
    return out.reshape(B, Cout, H, W)


# ----------------------------------------------------------------------------
# Pure-JAX reference (for correctness check)
# ----------------------------------------------------------------------------
def reference_forward(x, params):
    B, Cin, H, W = x.shape
    Cout, _, hm0, hm1 = params["wr_top"].shape
    w_top = jax.lax.complex(params["wr_top"], params["wi_top"])   # (Cout,Cin,hm0,hm1)
    w_bot = jax.lax.complex(params["wr_bot"], params["wi_bot"])
    x_ft = jnp.fft.rfft2(x, norm="forward")
    out_ft = jnp.zeros((B, Cout, H, W // 2 + 1), dtype=jnp.complex64)
    top = jnp.einsum("bixy,oixy->boxy", x_ft[:, :, :hm0, :hm1], w_top)
    bot = jnp.einsum("bixy,oixy->boxy", x_ft[:, :, H - hm0:, :hm1], w_bot)
    out_ft = out_ft.at[:, :, :hm0, :hm1].set(top)
    out_ft = out_ft.at[:, :, H - hm0:, :hm1].set(bot)
    x_fno = jnp.fft.irfft2(out_ft, s=(H, W), norm="forward")
    skip = jnp.einsum("oi,bihw->bohw", params["skip_w"], x)
    return x_fno + skip


if __name__ == "__main__":
    # Small config: in_channels=out_channels=4, n_modes=(8, 8), spatial 16x16, batch 2.
    B, Cin, Cout, H, W = 2, 4, 4, 16, 16
    n_modes = (8, 8)
    hm0, hm1 = n_modes[0] // 2, n_modes[1] // 2

    key = jax.random.PRNGKey(0)
    k1, k2, k3, k4, k5, kx = jax.random.split(key, 6)
    scale = (2.0 / (Cin + Cout)) ** 0.5
    params = {
        "wr_top": scale * jax.random.normal(k1, (Cout, Cin, hm0, hm1), jnp.float32),
        "wi_top": scale * jax.random.normal(k2, (Cout, Cin, hm0, hm1), jnp.float32),
        "wr_bot": scale * jax.random.normal(k3, (Cout, Cin, hm0, hm1), jnp.float32),
        "wi_bot": scale * jax.random.normal(k4, (Cout, Cin, hm0, hm1), jnp.float32),
        # 1x1 conv skip (fno_skip='linear', bias=False)
        "skip_w": (1.0 / Cin) * jax.random.normal(k5, (Cout, Cin), jnp.float32),
    }
    x = jax.random.normal(kx, (B, Cin, H, W), jnp.float32)

    out = jax.jit(fno_block_forward)(x, params)
    out = jax.block_until_ready(out)

    ref = reference_forward(x, params)
    assert out.shape == (B, Cout, H, W)
    assert jnp.allclose(out, ref, atol=2e-4, rtol=2e-4), \
        f"max abs err = {jnp.max(jnp.abs(out - ref))}"

    print("KERNEL_OK")
</pallas_src>

<mosaic_0001>
module attributes {stable_mosaic.version = 11 : i64} {
  func.func @_spectral_kernel(%arg0: i32, %arg1: memref<1x4x128xf32, #tpu.memory_space<vmem>>, %arg2: memref<1x4x128xf32, #tpu.memory_space<vmem>>, %arg3: memref<4x4x128xf32, #tpu.memory_space<vmem>>, %arg4: memref<4x4x128xf32, #tpu.memory_space<vmem>>, %arg5: memref<4x4x128xf32, #tpu.memory_space<vmem>>, %arg6: memref<1x4x128xf32, #tpu.memory_space<vmem>>, %arg7: memref<1x4x128xf32, #tpu.memory_space<vmem>>) attributes {dimension_semantics = [#tpu.dimension_semantics<parallel>], iteration_bounds = array<i64: 2>, scalar_prefetch = 0 : i64, scratch_operands = 0 : i64, tpu.core_type = #tpu.core_type<tc>, window_params = [{transform_indices = @transform_0, window_bounds = array<i64: 1, 4, 128>}, {transform_indices = @transform_1, window_bounds = array<i64: 1, 4, 128>}, {pipeline_mode = #tpu.pipeline_mode<synchronous>, transform_indices = @transform_2, window_bounds = array<i64: 4, 4, 128>}, {pipeline_mode = #tpu.pipeline_mode<synchronous>, transform_indices = @transform_3, window_bounds = array<i64: 4, 4, 128>}, {pipeline_mode = #tpu.pipeline_mode<synchronous>, transform_indices = @transform_4, window_bounds = array<i64: 4, 4, 128>}, {transform_indices = @transform_5, window_bounds = array<i64: 1, 4, 128>}, {transform_indices = @transform_6, window_bounds = array<i64: 1, 4, 128>}]} {
    %c0 = arith.constant 0 : index
    %c0_0 = arith.constant 0 : index
    %c0_1 = arith.constant 0 : index
    %0 = vector.load %arg1[%c0, %c0_0, %c0_1] : memref<1x4x128xf32, #tpu.memory_space<vmem>>, vector<1x4x128xf32>
    %1 = vector.shape_cast %0 : vector<1x4x128xf32> to vector<4x128xf32>
    %c0_2 = arith.constant 0 : index
    %c0_3 = arith.constant 0 : index
    %c0_4 = arith.constant 0 : index
    %2 = vector.load %arg2[%c0_2, %c0_3, %c0_4] : memref<1x4x128xf32, #tpu.memory_space<vmem>>, vector<1x4x128xf32>
    %3 = vector.shape_cast %2 : vector<1x4x128xf32> to vector<4x128xf32>
    %4 = arith.addf %1, %3 : vector<4x128xf32>
    %c0_5 = arith.constant 0 : index
    %c0_6 = arith.constant 0 : index
    %c0_7 = arith.constant 0 : index
    %5 = vector.load %arg3[%c0_5, %c0_6, %c0_7] : memref<4x4x128xf32, #tpu.memory_space<vmem>>, vector<1x4x128xf32>
    %6 = vector.shape_cast %5 : vector<1x4x128xf32> to vector<4x128xf32>
    %c0_8 = arith.constant 0 : index
    %c0_9 = arith.constant 0 : index
    %c0_10 = arith.constant 0 : index
    %7 = vector.load %arg4[%c0_8, %c0_9, %c0_10] : memref<4x4x128xf32, #tpu.memory_space<vmem>>, vector<1x4x128xf32>
    %8 = vector.shape_cast %7 : vector<1x4x128xf32> to vector<4x128xf32>
    %c0_11 = arith.constant 0 : index
    %c0_12 = arith.constant 0 : index
    %c0_13 = arith.constant 0 : index
    %9 = vector.load %arg5[%c0_11, %c0_12, %c0_13] : memref<4x4x128xf32, #tpu.memory_space<vmem>>, vector<1x4x128xf32>
    %10 = vector.shape_cast %9 : vector<1x4x128xf32> to vector<4x128xf32>
    %11 = vector.extract_strided_slice %1 {offsets = [0, 0], sizes = [1, 128], strides = [1, 1]} : vector<4x128xf32> to vector<1x128xf32>
    %12 = vector.extract_strided_slice %3 {offsets = [0, 0], sizes = [1, 128], strides = [1, 1]} : vector<4x128xf32> to vector<1x128xf32>
    %13 = vector.extract_strided_slice %4 {offsets = [0, 0], sizes = [1, 128], strides = [1, 1]} : vector<4x128xf32> to vector<1x128xf32>
    %14 = vector.broadcast %11 : vector<1x128xf32> to vector<4x128xf32>
    %15 = arith.mulf %6, %14 : vector<4x128xf32>
    %16 = vector.broadcast %12 : vector<1x128xf32> to vector<4x128xf32>
    %17 = arith.mulf %8, %16 : vector<4x128xf32>
    %18 = arith.subf %15, %17 : vector<4x128xf32>
    %19 = vector.broadcast %13 : vector<1x128xf32> to vector<4x128xf32>
    %20 = arith.mulf %10, %19 : vector<4x128xf32>
    %21 = arith.subf %20, %15 : vector<4x128xf32>
    %22 = arith.subf %21, %17 : vector<4x128xf32>
    %c1 = arith.constant 1 : index
    %c0_14 = arith.constant 0 : index
    %c0_15 = arith.constant 0 : index
    %23 = vector.load %arg3[%c1, %c0_14, %c0_15] : memref<4x4x128xf32, #tpu.memory_space<vmem>>, vector<1x4x128xf32>
    %24 = vector.shape_cast %23 : vector<1x4x128xf32> to vector<4x128xf32>
    %c1_16 = arith.constant 1 : index
    %c0_17 = arith.constant 0 : index
    %c0_18 = arith.constant 0 : index
    %25 = vector.load %arg4[%c1_16, %c0_17, %c0_18] : memref<4x4x128xf32, #tpu.memory_space<vmem>>, vector<1x4x128xf32>
    %26 = vector.shape_cast %25 : vector<1x4x128xf32> to vector<4x128xf32>
    %c1_19 = arith.constant 1 : index
    %c0_20 = arith.constant 0 : index
    %c0_21 = arith.constant 0 : index
    %27 = vector.load %arg5[%c1_19, %c0_20, %c0_21] : memref<4x4x128xf32, #tpu.memory_space<vmem>>, vector<1x4x128xf32>
    %28 = vector.shape_cast %27 : vector<1x4x128xf32> to vector<4x128xf32>
    %29 = vector.extract_strided_slice %1 {offsets = [1, 0], sizes = [1, 128], strides = [1, 1]} : vector<4x128xf32> to vector<1x128xf32>
    %30 = vector.extract_strided_slice %3 {offsets = [1, 0], sizes = [1, 128], strides = [1, 1]} : vector<4x128xf32> to vector<1x128xf32>
    %31 = vector.extract_strided_slice %4 {offsets = [1, 0], sizes = [1, 128], strides = [1, 1]} : vector<4x128xf32> to vector<1x128xf32>
    %32 = vector.broadcast %29 : vector<1x128xf32> to vector<4x128xf32>
    %33 = arith.mulf %24, %32 : vector<4x128xf32>
    %34 = vector.broadcast %30 : vector<1x128xf32> to vector<4x128xf32>
    %35 = arith.mulf %26, %34 : vector<4x128xf32>
    %36 = arith.subf %33, %35 : vector<4x128xf32>
    %37 = vector.broadcast %31 : vector<1x128xf32> to vector<4x128xf32>
    %38 = arith.mulf %28, %37 : vector<4x128xf32>
    %39 = arith.subf %38, %33 : vector<4x128xf32>
    %40 = arith.subf %39, %35 : vector<4x128xf32>
    %41 = arith.addf %18, %36 : vector<4x128xf32>
    %42 = arith.addf %22, %40 : vector<4x128xf32>
    %c2 = arith.constant 2 : index
    %c0_22 = arith.constant 0 : index
    %c0_23 = arith.constant 0 : index
    %43 = vector.load %arg3[%c2, %c0_22, %c0_23] : memref<4x4x128xf32, #tpu.memory_space<vmem>>, vector<1x4x128xf32>
    %44 = vector.shape_cast %43 : vector<1x4x128xf32> to vector<4x128xf32>
    %c2_24 = arith.constant 2 : index
    %c0_25 = arith.constant 0 : index
    %c0_26 = arith.constant 0 : index
    %45 = vector.load %arg4[%c2_24, %c0_25, %c0_26] : memref<4x4x128xf32, #tpu.memory_space<vmem>>, vector<1x4x128xf32>
    %46 = vector.shape_cast %45 : vector<1x4x128xf32> to vector<4x128xf32>
    %c2_27 = arith.constant 2 : index
    %c0_28 = arith.constant 0 : index
    %c0_29 = arith.constant 0 : index
    %47 = vector.load %arg5[%c2_27, %c0_28, %c0_29] : memref<4x4x128xf32, #tpu.memory_space<vmem>>, vector<1x4x128xf32>
    %48 = vector.shape_cast %47 : vector<1x4x128xf32> to vector<4x128xf32>
    %49 = vector.extract_strided_slice %1 {offsets = [2, 0], sizes = [1, 128], strides = [1, 1]} : vector<4x128xf32> to vector<1x128xf32>
    %50 = vector.extract_strided_slice %3 {offsets = [2, 0], sizes = [1, 128], strides = [1, 1]} : vector<4x128xf32> to vector<1x128xf32>
    %51 = vector.extract_strided_slice %4 {offsets = [2, 0], sizes = [1, 128], strides = [1, 1]} : vector<4x128xf32> to vector<1x128xf32>
    %52 = vector.broadcast %49 : vector<1x128xf32> to vector<4x128xf32>
    %53 = arith.mulf %44, %52 : vector<4x128xf32>
    %54 = vector.broadcast %50 : vector<1x128xf32> to vector<4x128xf32>
    %55 = arith.mulf %46, %54 : vector<4x128xf32>
    %56 = arith.subf %53, %55 : vector<4x128xf32>
    %57 = vector.broadcast %51 : vector<1x128xf32> to vector<4x128xf32>
    %58 = arith.mulf %48, %57 : vector<4x128xf32>
    %59 = arith.subf %58, %53 : vector<4x128xf32>
    %60 = arith.subf %59, %55 : vector<4x128xf32>
    %61 = arith.addf %41, %56 : vector<4x128xf32>
    %62 = arith.addf %42, %60 : vector<4x128xf32>
    %c3 = arith.constant 3 : index
    %c0_30 = arith.constant 0 : index
    %c0_31 = arith.constant 0 : index
    %63 = vector.load %arg3[%c3, %c0_30, %c0_31] : memref<4x4x128xf32, #tpu.memory_space<vmem>>, vector<1x4x128xf32>
    %64 = vector.shape_cast %63 : vector<1x4x128xf32> to vector<4x128xf32>
    %c3_32 = arith.constant 3 : index
    %c0_33 = arith.constant 0 : index
    %c0_34 = arith.constant 0 : index
    %65 = vector.load %arg4[%c3_32, %c0_33, %c0_34] : memref<4x4x128xf32, #tpu.memory_space<vmem>>, vector<1x4x128xf32>
    %66 = vector.shape_cast %65 : vector<1x4x128xf32> to vector<4x128xf32>
    %c3_35 = arith.constant 3 : index
    %c0_36 = arith.constant 0 : index
    %c0_37 = arith.constant 0 : index
    %67 = vector.load %arg5[%c3_35, %c0_36, %c0_37] : memref<4x4x128xf32, #tpu.memory_space<vmem>>, vector<1x4x128xf32>
    %68 = vector.shape_cast %67 : vector<1x4x128xf32> to vector<4x128xf32>
    %69 = vector.extract_strided_slice %1 {offsets = [3, 0], sizes = [1, 128], strides = [1, 1]} : vector<4x128xf32> to vector<1x128xf32>
    %70 = vector.extract_strided_slice %3 {offsets = [3, 0], sizes = [1, 128], strides = [1, 1]} : vector<4x128xf32> to vector<1x128xf32>
    %71 = vector.extract_strided_slice %4 {offsets = [3, 0], sizes = [1, 128], strides = [1, 1]} : vector<4x128xf32> to vector<1x128xf32>
    %72 = vector.broadcast %69 : vector<1x128xf32> to vector<4x128xf32>
    %73 = arith.mulf %64, %72 : vector<4x128xf32>
    %74 = vector.broadcast %70 : vector<1x128xf32> to vector<4x128xf32>
    %75 = arith.mulf %66, %74 : vector<4x128xf32>
    %76 = arith.subf %73, %75 : vector<4x128xf32>
    %77 = vector.broadcast %71 : vector<1x128xf32> to vector<4x128xf32>
    %78 = arith.mulf %68, %77 : vector<4x128xf32>
    %79 = arith.subf %78, %73 : vector<4x128xf32>
    %80 = arith.subf %79, %75 : vector<4x128xf32>
    %81 = arith.addf %61, %76 : vector<4x128xf32>
    %82 = arith.addf %62, %80 : vector<4x128xf32>
    %c0_38 = arith.constant 0 : index
    %c0_39 = arith.constant 0 : index
    %c0_40 = arith.constant 0 : index
    %83 = vector.load %arg6[%c0_38, %c0_39, %c0_40] : memref<1x4x128xf32, #tpu.memory_space<vmem>>, vector<1x4x128xf32>
    %84 = vector.shape_cast %83 : vector<1x4x128xf32> to vector<4x128xf32>
    %85 = vector.shape_cast %81 : vector<4x128xf32> to vector<1x4x128xf32>
    tpu.vector_store %arg6[%c0_38, %c0_39, %c0_40], %85 {strides = array<i32>} : memref<1x4x128xf32, #tpu.memory_space<vmem>>, vector<1x4x128xf32>,
    %c0_41 = arith.constant 0 : index
    %c0_42 = arith.constant 0 : index
    %c0_43 = arith.constant 0 : index
    %86 = vector.load %arg7[%c0_41, %c0_42, %c0_43] : memref<1x4x128xf32, #tpu.memory_space<vmem>>, vector<1x4x128xf32>
    %87 = vector.shape_cast %86 : vector<1x4x128xf32> to vector<4x128xf32>
    %88 = vector.shape_cast %82 : vector<4x128xf32> to vector<1x4x128xf32>
    tpu.vector_store %arg7[%c0_41, %c0_42, %c0_43], %88 {strides = array<i32>} : memref<1x4x128xf32, #tpu.memory_space<vmem>>, vector<1x4x128xf32>,
    return
  }
  func.func @transform_0(%arg0: i32) -> (i32, i32, i32) {
    %c0_i32 = arith.constant 0 : i32
    %c0_i32_0 = arith.constant 0 : i32
    %c0_i32_1 = arith.constant 0 : i32
    return %arg0, %c0_i32, %c0_i32_0 : i32, i32, i32
  }
  func.func @transform_1(%arg0: i32) -> (i32, i32, i32) {
    %c0_i32 = arith.constant 0 : i32
    %c0_i32_0 = arith.constant 0 : i32
    %c0_i32_1 = arith.constant 0 : i32
    return %arg0, %c0_i32, %c0_i32_0 : i32, i32, i32
  }
  func.func @transform_2(%arg0: i32) -> (i32, i32, i32) {
    %c0_i32 = arith.constant 0 : i32
    %c0_i32_0 = arith.constant 0 : i32
    %c0_i32_1 = arith.constant 0 : i32
    %c0_i32_2 = arith.constant 0 : i32
    return %c0_i32, %c0_i32_0, %c0_i32_1 : i32, i32, i32
  }
  func.func @transform_3(%arg0: i32) -> (i32, i32, i32) {
    %c0_i32 = arith.constant 0 : i32
    %c0_i32_0 = arith.constant 0 : i32
    %c0_i32_1 = arith.constant 0 : i32
    %c0_i32_2 = arith.constant 0 : i32
    return %c0_i32, %c0_i32_0, %c0_i32_1 : i32, i32, i32
  }
  func.func @transform_4(%arg0: i32) -> (i32, i32, i32) {
    %c0_i32 = arith.constant 0 : i32
    %c0_i32_0 = arith.constant 0 : i32
    %c0_i32_1 = arith.constant 0 : i32
    %c0_i32_2 = arith.constant 0 : i32
    return %c0_i32, %c0_i32_0, %c0_i32_1 : i32, i32, i32
  }
  func.func @transform_5(%arg0: i32) -> (i32, i32, i32) {
    %c0_i32 = arith.constant 0 : i32
    %c0_i32_0 = arith.constant 0 : i32
    %c0_i32_1 = arith.constant 0 : i32
    return %arg0, %c0_i32, %c0_i32_0 : i32, i32, i32
  }
  func.func @transform_6(%arg0: i32) -> (i32, i32, i32) {
    %c0_i32 = arith.constant 0 : i32
    %c0_i32_0 = arith.constant 0 : i32
    %c0_i32_1 = arith.constant 0 : i32
    return %arg0, %c0_i32, %c0_i32_0 : i32, i32, i32
  }
}

module attributes {stable_mosaic.version = 11 : i64} {
  func.func @_skip_add_kernel(%arg0: i32, %arg1: i32, %arg2: memref<1x4x256xf32, #tpu.memory_space<vmem>>, %arg3: memref<4x4xf32, #tpu.memory_space<vmem>>, %arg4: memref<1x4x256xf32, #tpu.memory_space<vmem>>, %arg5: memref<1x4x256xf32, #tpu.memory_space<vmem>>) attributes {dimension_semantics = [#tpu.dimension_semantics<parallel>, #tpu.dimension_semantics<parallel>], iteration_bounds = array<i64: 2, 1>, scalar_prefetch = 0 : i64, scratch_operands = 0 : i64, tpu.core_type = #tpu.core_type<tc>, window_params = [{transform_indices = @transform_0, window_bounds = array<i64: 1, 4, 256>}, {pipeline_mode = #tpu.pipeline_mode<synchronous>, transform_indices = @transform_1, window_bounds = array<i64: 4, 4>}, {transform_indices = @transform_2, window_bounds = array<i64: 1, 4, 256>}, {transform_indices = @transform_3, window_bounds = array<i64: 1, 4, 256>}]} {
    %c0 = arith.constant 0 : index
    %c0_0 = arith.constant 0 : index
    %c0_1 = arith.constant 0 : index
    %0 = vector.load %arg2[%c0, %c0_0, %c0_1] : memref<1x4x256xf32, #tpu.memory_space<vmem>>, vector<1x4x256xf32>
    %1 = vector.shape_cast %0 : vector<1x4x256xf32> to vector<4x256xf32>
    %c0_2 = arith.constant 0 : index
    %c0_3 = arith.constant 0 : index
    %2 = vector.load %arg3[%c0_2, %c0_3] : memref<4x4xf32, #tpu.memory_space<vmem>>, vector<4x4xf32>
    %cst = arith.constant dense<0.000000e+00> : vector<4x256xf32>
    %3 = tpu.matmul %2, %1, %cst {dimension_numbers = #tpu.dot_dimension_numbers<[1], [0], [0], [1], [0, 0, 1, 1], [], []>} : vector<4x4xf32>, vector<4x256xf32>, vector<4x256xf32> -> vector<4x256xf32>
    %c0_4 = arith.constant 0 : index
    %c0_5 = arith.constant 0 : index
    %c0_6 = arith.constant 0 : index
    %4 = vector.load %arg4[%c0_4, %c0_5, %c0_6] : memref<1x4x256xf32, #tpu.memory_space<vmem>>, vector<1x4x256xf32>
    %5 = vector.shape_cast %4 : vector<1x4x256xf32> to vector<4x256xf32>
    %6 = arith.addf %5, %3 : vector<4x256xf32>
    %c0_7 = arith.constant 0 : index
    %c0_8 = arith.constant 0 : index
    %c0_9 = arith.constant 0 : index
    %7 = vector.load %arg5[%c0_7, %c0_8, %c0_9] : memref<1x4x256xf32, #tpu.memory_space<vmem>>, vector<1x4x256xf32>
    %8 = vector.shape_cast %7 : vector<1x4x256xf32> to vector<4x256xf32>
    %9 = vector.shape_cast %6 : vector<4x256xf32> to vector<1x4x256xf32>
    tpu.vector_store %arg5[%c0_7, %c0_8, %c0_9], %9 {strides = array<i32>} : memref<1x4x256xf32, #tpu.memory_space<vmem>>, vector<1x4x256xf32>,
    return
  }
  func.func @transform_0(%arg0: i32, %arg1: i32) -> (i32, i32, i32) {
    %c0_i32 = arith.constant 0 : i32
    %c0_i32_0 = arith.constant 0 : i32
    return %arg0, %c0_i32, %arg1 : i32, i32, i32
  }
  func.func @transform_1(%arg0: i32, %arg1: i32) -> (i32, i32) {
    %c0_i32 = arith.constant 0 : i32
    %c0_i32_0 = arith.constant 0 : i32
    %c0_i32_1 = arith.constant 0 : i32
    return %c0_i32, %c0_i32_0 : i32, i32
  }
  func.func @transform_2(%arg0: i32, %arg1: i32) -> (i32, i32, i32) {
    %c0_i32 = arith.constant 0 : i32
    %c0_i32_0 = arith.constant 0 : i32
    return %arg0, %c0_i32, %arg1 : i32, i32, i32
  }
  func.func @transform_3(%arg0: i32, %arg1: i32) -> (i32, i32, i32) {
    %c0_i32 = arith.constant 0 : i32
    %c0_i32_0 = arith.constant 0 : i32
    return %arg0, %c0_i32, %arg1 : i32, i32, i32
  }
}

</mosaic_0001>

<bundles_post_ra>
// kernel: reverse.0
= control target key start
LH: loop header
LB: loop body
LE: loop exit
PB: predicated region body
PF: predicated region fallthrough
CT: control target
= control target key end

     0   :  { %v72_v3 = vlaneseq  ;;  %v65_v9 = vld [vmem:[#allocation0 + $0x7] ss:$-1 sm:$0xff]  ;;  %v79_v12 = vld [vmem:[#allocation0 + $0x17] ss:$-1 sm:$0xff]  ;;  %s331_s0 = inlined_call_operand.vmem [shape: f32[2,4,16,7], index: 0, kind: input, shape index: {}]   ;;  %s332_s1 = inlined_call_operand.vmem [shape: f32[2,4,16,7], index: 1, kind: output, shape index: {}]  }
   0x1   :  { %v45_v0 = vld [vmem:[%s331_s0] sm:$0xff]  ;;  %v47_v1 = vld [vmem:[%s331_s0 + $0x8] sm:$0xff]  ;;  %v49_v2 = vld [vmem:[%s331_s0 + $0x10] sm:$0xff]  ;;  %v66_v10 = vrot.slane %v65_v9, 1  ;;  %v80_v14 = vrot.slane %v79_v12, 1 }
   0x2   :  { %46 = vst [vmem:[#allocation0 + $0x8] sm:$0xff] %v45_v0  ;;  %48 = vst [vmem:[#allocation0 + $0x18] sm:$0xff] %v47_v1  ;;  %v51_v4 = vld [vmem:[%s331_s0 + $0x18] sm:$0xff]  ;;  %v53_v5 = vld [vmem:[%s331_s0 + $0x20] sm:$0xff]  ;;  %v73_v11 = vshrl.u32 %v72_v3, 7 }
   0x3   :  { %50 = vst [vmem:[#allocation0 + $0x28] sm:$0xff] %v49_v2  ;;  %v55_v6 = vld [vmem:[%s331_s0 + $0x28] sm:$0xff]  ;;  %52 = vst [vmem:[#allocation0 + $0x38] sm:$0xff] %v51_v4  ;;  %v57_v7 = vld [vmem:[%s331_s0 + $0x30] sm:$0xff] }
   0x4   :  { %54 = vst [vmem:[#allocation0 + $0x48] sm:$0xff] %v53_v5  ;;  %56 = vst [vmem:[#allocation0 + $0x58] sm:$0xff] %v55_v6  ;;  %v59_v8 = vld [vmem:[%s331_s0 + $0x38] sm:$0xff]  ;;  %v93_v13 = vld [vmem:[#allocation0 + $0x27] ss:$-1 sm:$0xff]  ;;  %vm74_vm0 = vcmp.lt.s32.totalorder %v73_v11, 7 }
   0x5   :  { %58 = vst [vmem:[#allocation0 + $0x68] sm:$0xff] %v57_v7  ;;  %60 = vst [vmem:[#allocation0 + $0x78] sm:$0xff] %v59_v8  ;;  %v94_v15 = vrot.slane %v93_v13, 1  ;;  %v107_v16 = vld [vmem:[#allocation0 + $0x37] ss:$-1 sm:$0xff] }
   0x6   :  { %67 = vst [vmem:[#allocation1] sm:$0xff] %v66_v10  ;;  %v108_v17 = vrot.slane %v107_v16, 1  ;;  %v121_v18 = vld [vmem:[#allocation0 + $0x47] ss:$-1 sm:$0xff]  ;;  %v135_v19 = vld [vmem:[#allocation0 + $0x57] ss:$-1 sm:$0xff] }
   0x7   :  { %81 = vst [vmem:[#allocation1 + $0x8] sm:$0xff] %v80_v14  ;;  %95 = vst [vmem:[#allocation1 + $0x10] sm:$0xff] %v94_v15  ;;  %v122_v20 = vrot.slane %v121_v18, 1  ;;  %v136_v21 = vrot.slane %v135_v19, 1  ;;  %v149_v22 = vld [vmem:[#allocation0 + $0x67] ss:$-1 sm:$0xff] }
   0x8   :  { %v163_v23 = vld [vmem:[#allocation0 + $0x77] ss:$-1 sm:$0xff]  ;;  %109 = vst [vmem:[#allocation1 + $0x18] sm:$0xff] %v108_v17  ;;  %v150_v24 = vrot.slane %v149_v22, 1 }
   0x9   :  { %v164_v25 = vrot.slane %v163_v23, 1  ;;  %v70_v26 = vld [vmem:[#allocation0 + $0xf] ss:$-1 sm:$0xff]  ;;  %v84_v27 = vld [vmem:[#allocation0 + $0x1f] ss:$-1 sm:$0xff]  ;;  %123 = vst [vmem:[#allocation1 + $0x20] sm:$0xff] %v122_v20 }
   0xa   :  { %v98_v28 = vld [vmem:[#allocation0 + $0x2f] ss:$-1 sm:$0xff]  ;;  %137 = vst [vmem:[#allocation1 + $0x28] sm:$0xff] %v136_v21  ;;  %v71_v29 = vrot.slane %v70_v26, 1  ;;  %v85_v30 = vrot.slane %v84_v27, 1  ;;  %151 = vst [vmem:[#allocation1 + $0x30] sm:$0xff] %v150_v24 }
   0xb   :  { %v99_v31 = vrot.slane %v98_v28, 1  ;;  %v112_v32 = vld [vmem:[#allocation0 + $0x3f] ss:$-1 sm:$0xff]  ;;  %165 = vst [vmem:[#allocation1 + $0x38] sm:$0xff] %v164_v25  ;;  %v126_v34 = vld [vmem:[#allocation0 + $0x4f] ss:$-1 sm:$0xff] }
   0xc   :  { %v113_v33 = vrot.slane %v112_v32, 1  ;;  %v140_v35 = vld [vmem:[#allocation0 + $0x5f] ss:$-1 sm:$0xff]  ;;  %75 = vst.msk [vmem:[#allocation1] sm:$0xff] %vm74_vm0, %v71_v29  ;;  %89 = vst.msk [vmem:[#allocation1 + $0x8] sm:$0xff] %vm74_vm0, %v85_v30  ;;  %v127_v36 = vrot.slane %v126_v34, 1 }
   0xd   :  { %103 = vst.msk [vmem:[#allocation1 + $0x10] sm:$0xff] %vm74_vm0, %v99_v31  ;;  %v141_v37 = vrot.slane %v140_v35, 1  ;;  %v154_v38 = vld [vmem:[#allocation0 + $0x6f] ss:$-1 sm:$0xff]  ;;  %v168_v39 = vld [vmem:[#allocation0 + $0x7f] ss:$-1 sm:$0xff] }
   0xe   :  { %117 = vst.msk [vmem:[#allocation1 + $0x18] sm:$0xff] %vm74_vm0, %v113_v33  ;;  %v155_v40 = vrot.slane %v154_v38, 1  ;;  %v169_v41 = vrot.slane %v168_v39, 1  ;;  %131 = vst.msk [vmem:[#allocation1 + $0x20] sm:$0xff] %vm74_vm0, %v127_v36 }
   0xf   :  { %145 = vst.msk [vmem:[#allocation1 + $0x28] sm:$0xff] %vm74_vm0, %v141_v37 }
  0x10   :  { %159 = vst.msk [vmem:[#allocation1 + $0x30] sm:$0xff] %vm74_vm0, %v155_v40  ;;  %173 = vst.msk [vmem:[#allocation1 + $0x38] sm:$0xff] %vm74_vm0, %v169_v41 }
  0x13   :  { %v216_v42 = vld [vmem:[#allocation1] sm:$0xff]  ;;  %v218_v43 = vld [vmem:[#allocation1 + $0x8] sm:$0xff] }
  0x14   :  { %v220_v44 = vld [vmem:[#allocation1 + $0x10] sm:$0xff]  ;;  %217 = vst [vmem:[%s332_s1] sm:$0xff] %v216_v42  ;;  %219 = vst [vmem:[%s332_s1 + $0x8] sm:$0xff] %v218_v43 }
  0x15   :  { %221 = vst [vmem:[%s332_s1 + $0x10] sm:$0xff] %v220_v44  ;;  %v222_v45 = vld [vmem:[#allocation1 + $0x18] sm:$0xff]  ;;  %v224_v46 = vld [vmem:[#allocation1 + $0x20] sm:$0xff] }
  0x16   :  { %223 = vst [vmem:[%s332_s1 + $0x18] sm:$0xff] %v222_v45  ;;  %v226_v47 = vld [vmem:[#allocation1 + $0x28] sm:$0xff]  ;;  %225 = vst [vmem:[%s332_s1 + $0x20] sm:$0xff] %v224_v46 }
  0x17   :  { %227 = vst [vmem:[%s332_s1 + $0x28] sm:$0xff] %v226_v47  ;;  %v228_v48 = vld [vmem:[#allocation1 + $0x30] sm:$0xff]  ;;  %v230_v49 = vld [vmem:[#allocation1 + $0x38] sm:$0xff] }
  0x18   :  { %229 = vst [vmem:[%s332_s1 + $0x30] sm:$0xff] %v228_v48  ;;  %231 = vst [vmem:[%s332_s1 + $0x38] sm:$0xff] %v230_v49 }

// kernel: fno_block_forward.2
= control target key start
LH: loop header
LB: loop body
LE: loop exit
PB: predicated region body
PF: predicated region fallthrough
CT: control target
= control target key end

     0   :  { %s546_s21 = smov 0   ;;  %s611_s0 = inlined_call_operand.vmem [shape: f32[2,4,128], index: 0, kind: input, shape index: {}]   ;;  %s612_s1 = inlined_call_operand.vmem [shape: f32[2,4,128], index: 1, kind: input, shape index: {}]   ;;  %s613_s2 = inlined_call_operand.vmem [shape: f32[4,4,128], index: 2, kind: input, shape index: {}]   ;;  %s614_s3 = inlined_call_operand.vmem [shape: f32[4,4,128], index: 3, kind: input, shape index: {}]   ;;  %s615_s4 = inlined_call_operand.vmem [shape: f32[4,4,128], index: 4, kind: input, shape index: {}]   ;;  %s616_s5 = inlined_call_operand.vmem [shape: f32[2,4,128], index: 5, kind: output, shape index: {0}]   ;;  %s617_s6 = inlined_call_operand.vmem [shape: f32[2,4,128], index: 6, kind: output, shape index: {1}]  }
   0x1 LB: > { %s475_s22 = sadd.s32 4294967295, %s509_s21   ;;  %p479_p0 = scmp.ge.s32.totalorder %s509_s21, 1  ;;  %s509_s21 = sphi %s546_s21, %s17_s21  }
   0x2   : > { %p223_p1 = scmp.lt.s32.totalorder %s509_s21, 3 }
   0x4   : > { %p224_p2 = pnand %p479_p0, %p223_p1 }
   0x5   : > { %p259_p3 = scmp.lt.s32.totalorder (!%p224_p2), %s475_s22, 1 }
   0x6   : > { %227 = sbr.rel (%p224_p2) target bundleno = 36 (0x24), region = 40 }
   0xb   : > { %v281_v0 = vlaneseq  ;;  %s619_s22 = smov (!%p259_p3, %s475_s22), 1  ;;  %v278_v6 = vld [vmem:[%s613_s2] sm:$0xf]  ;;  %v484_v8 = vld [vmem:[%s613_s2 + $0x4] sm:$0xf] }
   0xc   : > { %s554_s23 = sshll.u32 %s619_s22, 2  ;;  %v279_v7 = vld [vmem:[%s614_s3] sm:$0xf]  ;;  %v485_v11 = vld [vmem:[%s614_s3 + $0x4] sm:$0xf] }
   0xd   : > { %v282_v1 = vshrl.u32 %v281_v0, 7  ;;  %s262_s26 = scalar_lea.vmem %s611_s0, %s554_s23  ;;  %s266_s29 = scalar_lea.vmem %s612_s1, %s554_s23  ;;  %v487_v16 = vld [vmem:[%s613_s2 + $0x8] sm:$0xf]  ;;  %v490_v18 = vld [vmem:[%s613_s2 + $0xc] sm:$0xf] }
   0xe   : > { %v275_v9 = vld [vmem:[%s262_s26] sm:$0xf]  ;;  %v488_v17 = vld [vmem:[%s614_s3 + $0x8] sm:$0xf]  ;;  %v491_v22 = vld [vmem:[%s614_s3 + $0xc] sm:$0xf]  ;;  %s270_s10 = scalar_lea.vmem %s616_s5, %s554_s23  ;;  %s274_s13 = scalar_lea.vmem %s617_s6, %s554_s23 }
   0xf   : > { %v283_v2 = vsub.s32 0, %v282_v1  ;;  %v307_v3 = vsub.s32 1, %v282_v1  ;;  %v333_v4 = vsub.s32 2, %v282_v1  ;;  %v359_v5 = vsub.s32 3, %v282_v1  ;;  %v276_v10 = vld [vmem:[%s266_s29] sm:$0xf] }
  0x10   : > { %v277_v12 = vadd.f32 %v276_v10, %v275_v9  ;;  %v280_v32 = vld [vmem:[%s615_s4] sm:$0xf]  ;;  %v486_v33 = vld [vmem:[%s615_s4 + $0x4] sm:$0xf]  ;;  %v489_v38 = vld [vmem:[%s615_s4 + $0x8] sm:$0xf] }
  0x11   : > { %v284_v13 = vrot.slane %v275_v9, %v283_v2  ;;  %v289_v14 = vrot.slane %v276_v10, %v283_v2  ;;  %v308_v15 = vrot.slane %v275_v9, %v307_v3  ;;  %v313_v19 = vrot.slane %v276_v10, %v307_v3  ;;  %v492_v39 = vld [vmem:[%s615_s4 + $0xc] sm:$0xf] }
  0x12   : > { %v334_v20 = vrot.slane %v275_v9, %v333_v4  ;;  %v339_v21 = vrot.slane %v276_v10, %v333_v4  ;;  %v360_v23 = vrot.slane %v275_v9, %v359_v5  ;;  %v365_v27 = vrot.slane %v276_v10, %v359_v5 }
  0x13   : > { %v285_v24 = vmul.f32 %v284_v13, %v278_v6  ;;  %v290_v25 = vmul.f32 %v289_v14, %v279_v7  ;;  %v309_v26 = vmul.f32 %v484_v8, %v308_v15  ;;  %v314_v28 = vmul.f32 %v485_v11, %v313_v19 }
  0x14   : > { %v335_v29 = vmul.f32 %v487_v16, %v334_v20  ;;  %v340_v30 = vmul.f32 %v488_v17, %v339_v21  ;;  %v361_v31 = vmul.f32 %v490_v18, %v360_v23  ;;  %v366_v35 = vmul.f32 %v491_v22, %v365_v27 }
  0x15   : > { %v291_v34 = vsub.f32 %v285_v24, %v290_v25  ;;  %v295_v36 = vrot.slane %v277_v12, %v283_v2  ;;  %v319_v37 = vrot.slane %v277_v12, %v307_v3  ;;  %v315_v40 = vsub.f32 %v309_v26, %v314_v28 }
  0x16   : > { %v341_v41 = vsub.f32 %v335_v29, %v340_v30  ;;  %v345_v42 = vrot.slane %v277_v12, %v333_v4  ;;  %v371_v43 = vrot.slane %v277_v12, %v359_v5  ;;  %v367_v47 = vsub.f32 %v361_v31, %v366_v35 }
  0x17   : > { %v296_v44 = vmul.f32 %v295_v36, %v280_v32  ;;  %v320_v45 = vmul.f32 %v486_v33, %v319_v37  ;;  %v323_v46 = vadd.f32 %v315_v40, %v291_v34 }
  0x18   : > { %v346_v48 = vmul.f32 %v489_v38, %v345_v42  ;;  %v372_v49 = vmul.f32 %v492_v39, %v371_v43 }
  0x19   : > { %v297_v50 = vsub.f32 %v296_v44, %v285_v24  ;;  %v321_v51 = vsub.f32 %v320_v45, %v309_v26  ;;  %v349_v52 = vadd.f32 %v341_v41, %v323_v46 }
  0x1a   : > { %v347_v53 = vsub.f32 %v346_v48, %v335_v29  ;;  %v373_v54 = vsub.f32 %v372_v49, %v361_v31 }
  0x1b   : > { %v298_v55 = vsub.f32 %v297_v50, %v290_v25  ;;  %v322_v56 = vsub.f32 %v321_v51, %v314_v28  ;;  %v375_v57 = vadd.f32 %v367_v47, %v349_v52 }
  0x1c   : > { %v348_v58 = vsub.f32 %v347_v53, %v340_v30  ;;  %v374_v60 = vsub.f32 %v373_v54, %v366_v35 }
  0x1d   : > { %v324_v59 = vadd.f32 %v322_v56, %v298_v55  ;;  %377 = vst [vmem:[%s270_s10] sm:$0xf] %v375_v57 }
  0x1f   : > { %v350_v61 = vadd.f32 %v348_v58, %v324_v59 }
  0x21   : > { %v376_v62 = vadd.f32 %v374_v60, %v350_v61 }
  0x23   : > { %378 = vst [vmem:[%s274_s13] sm:$0xf] %v376_v62 }
  0x24 PF: > { %s17_s21 = sadd.s32 1, %s509_s21  }
  0x25   : > { %p14_p4 = scmp.ge.s32.totalorder %s17_s21, 4  }
  0x27   :  { %16 = sbr.rel (!%p14_p4) target bundleno = 1 (0x1), region = 94 }

// kernel: fno_block_forward.3
= control target key start
LH: loop header
LB: loop body
LE: loop exit
PB: predicated region body
PF: predicated region fallthrough
CT: control target
= control target key end

     0   :  { %s532_s12 = smov 0   ;;  %s534_s13 = smov 0   ;;  %s568_s0 = inlined_call_operand.vmem [shape: f32[2,4,256], index: 0, kind: input, shape index: {}]   ;;  %s569_s1 = inlined_call_operand.vmem [shape: f32[4,4], index: 1, kind: input, shape index: {}]   ;;  %s570_s2 = inlined_call_operand.vmem [shape: f32[2,4,256], index: 2, kind: input, shape index: {}, may-alias: {2,3}]   ;;  %s571_s3 = inlined_call_operand.vmem [shape: f32[2,4,256], index: 3, kind: output, shape index: {}, may-alias: {2,3}]  }
   0x1   :  { %s536_s14 = smov 0  }
   0x2 LB: > { %s25_s15 = sadd.s32 1, %s505_s13  ;;  %p446_p0 = scmp.ge.s32.totalorder %s509_s14, 1  ;;  %s509_s14 = sphi %s536_s14, %s13_s14   ;;  %s505_s13 = sphi %s534_s13, %s573_s13   ;;  %s501_s12 = sphi %s532_s12, %s572_s12  }
   0x3   : > { %p27_p1 = scmp.ge.s32.totalorder %s25_s15, 2  ;;  %p175_p2 = scmp.lt.s32.totalorder %s509_s14, 3 }
   0x5   : > { %s575_s15 = smov (%p27_p1, %s25_s15), 0  ;;  %p176_p3 = pnand %p446_p0, %p175_p2 }
   0x6   : > { %p217_p4 = scmp.lt.s32.totalorder (!%p176_p3), %s501_s12, 1 }
   0x7   : > { %179 = sbr.rel (%p176_p3) target bundleno = 220 (0xdc), region = 32 }
   0xc   : > { %v511_v0 = vmov 0.0   ;;  %s577_s12 = smov (!%p217_p4, %s501_s12), 1  ;;  %vm254_vm0 = vcmask 1043456   ;;  %v247_v3 = vld [vmem:[%s569_s1] sm:$0xf]  ;;  %vm250_vm1 = vcmask 31744  }
   0xd   : > { %323 = vmatprep.mubr.f32.mxu0 %v511_v0  ;;  %s458_s16 = sshll.u32 %s577_s12, 3 }
   0xe   : > { %s224_s19 = scalar_lea.vmem %s568_s0, %s458_s16  ;;  %s234_s24 = scalar_lea.vmem %s570_s2, %s458_s16 }
   0xf   : > { %v246_v1 = vld [vmem:[%s224_s19] sm:$0xff]  ;;  %s244_s27 = scalar_lea.vmem %s571_s3, %s458_s16 }
  0x10   : > { %v249_v2 = vcombine.high %v246_v1, %v246_v1  ;;  %v330_v6 = vld [vmem:[%s234_s24] sm:$0xff] }
  0x12   : > { %453 = vmatprep.subr.msk.mxu0 %vm254_vm0, %v249_v2 }
  0x13   : > { %454 = vmatpush1.msk.msra.mxu0 %vm254_vm0, %v246_v1 }
  0x14   : > { %455 = vmatmul.mubr.msk.f32.vlgmr.msra.gmra.mxu0 %vm250_vm1, %v247_v3 }
  0xd4   : > { %v325_v4 = vpop.f32.mrf.mxu0 }
  0xd6   : > { %v327_v5 = vpop.f32.mrf.mxu0 }
  0xd7   : > { %v333_v7 = vcombine.low %v325_v4, %v327_v5 }
  0xd9   : > { %v335_v8 = vadd.f32 %v333_v7, %v330_v6 }
  0xdb   : > { %336 = vst [vmem:[%s244_s27] sm:$0xff] %v335_v8 }
  0xdc PF: > { %s13_s14 = sadd.s32 1, %s509_s14   ;;  %s572_s12 = smov %s505_s13 }
  0xdd   : > { %p10_p5 = scmp.ge.s32.totalorder %s13_s14, 4   ;;  %s573_s13 = smov %s575_s15 }
  0xdf   :  { %12 = sbr.rel (!%p10_p5) target bundleno = 2 (0x2), region = 65 }

</bundles_post_ra>
